<compile_context>
chip_gen: v7x
topology: tpu7x:2x2x1
jax: 0.10.0
libtpu: 0.0.40
codegen_flags: <defaults>
</compile_context>

<pallas_src>
import functools

import jax
import jax.numpy as jnp
from jax.experimental import pallas as pl
from jax.experimental.pallas import tpu as pltpu


_LANES = 128
_GROUP = 2 * _LANES                        # 256-lane accumulation groups
_MAX_TILE_ROWS = 64                        # bound (tr, 256) f32 vreg pressure
_MAX_GROUPS = 256                          # cap on statically unrolled groups
_PER_BUFFER_VMEM_BYTES = 4 * 1024 * 1024   # ~4 MiB per input buffer (x2 bufs)
_NUM_HW_SPLITS = 2                         # leading parallel axis (v7x 2 TCs)


def _cdiv(a, b):
    return -(-a // b)


def _round_up(v, m):
    return _cdiv(v, m) * m


def _sublane_multiple(dtype):
    return {4: 8, 2: 16, 1: 32}.get(int(jnp.dtype(dtype).itemsize), 8)


def _spectral_attention_kernel(x_ref, part_ref, acc_ref, *, hw, thw, n_steps,
                               needs_mask):
    """Grid = (hw_split, row_tiles, hw_steps); reduction (hw_steps) innermost.

    x_ref    : VMEM (TR, THW)       -- input tile (edge lanes masked here)
    part_ref : VMEM (1, TR, 1) f32  -- per-half partial row sums (last step)
    acc_ref  : VMEM (TR, 256) f32   -- per-row partial sums (VPU accumulation)
    """
    p = pl.program_id(0)   # which half of the H*W reduction
    j = pl.program_id(2)   # reduction step within this half

    @pl.when(j == 0)
    def _init():
        acc_ref[...] = jnp.zeros_like(acc_ref)

    n_groups = thw // _GROUP
    if needs_mask:
        # Nominal global lane offset of this tile (independent of the clamping
        # in the index_map, so fully out-of-range tiles contribute zero).
        start = (p * n_steps + j) * thw
        lane = jax.lax.broadcasted_iota(jnp.int32, (1, _GROUP), 1)

    def load_group(g):
        v = x_ref[:, g * _GROUP:(g + 1) * _GROUP].astype(jnp.float32)
        if needs_mask:
            v = jnp.where(start + g * _GROUP + lane < hw, v, 0.0)
        return v

    # Two independent accumulation chains over 256-lane groups (VPU only).
    p0 = load_group(0)
    p1 = None
    for g in range(1, n_groups):
        if g % 2 == 1:
            p1 = load_group(g) if p1 is None else p1 + load_group(g)
        else:
            p0 = p0 + load_group(g)
    acc_ref[...] += p0 if p1 is None else p0 + p1

    @pl.when(j == n_steps - 1)
    def _finalize():
        # Single cross-lane (XLU) reduce per (half, row-tile).
        row_sum = jnp.sum(acc_ref[...], axis=-1, keepdims=True)   # (TR, 1)
        part_ref[...] = row_sum.reshape(part_ref.shape)


def _reference(x, conv_weight):
    y = jnp.mean(x.astype(jnp.float32), axis=(2, 3))               # (b, c)
    y = y * conv_weight.reshape(()).astype(jnp.float32)            # Conv1d(1,1,1)
    return jax.nn.sigmoid(y).astype(x.dtype)[:, :, None, None]


def spectral_attention(x, conv_weight, *, tile_rows=None, tile_hw=None,
                       use_pallas=True):
    """x: (b, c, h, w) NCHW; conv_weight: (1,1,1) Conv1d weight. Returns (b, c, 1, 1)."""
    b, c, h, w = x.shape
    if c != 1:
        # The PyTorch module's Conv1d(1, 1, k=1) only accepts c == 1.
        raise ValueError("SpectralAttention requires c == 1 (Conv1d in_channels=1).")

    rows, hw = b * c, h * w
    if not use_pallas:
        return _reference(x, conv_weight)

    dtype = x.dtype
    itemsize = int(jnp.dtype(dtype).itemsize)
    sub = _sublane_multiple(dtype)

    # Row tile: dtype-aware sublane rounding, capped to bound vreg pressure.
    tr = tile_rows if tile_rows is not None else min(rows, _MAX_TILE_ROWS)
    tr = _round_up(tr, sub)

    # hw tile: sized from the per-buffer VMEM budget, but never wider than one
    # half of the reduction needs and never more groups than we unroll.
    if tile_hw is not None:
        thw = _round_up(tile_hw, _GROUP)
    else:
        by_vmem = (_PER_BUFFER_VMEM_BYTES // (tr * itemsize)) // _GROUP * _GROUP
        by_unroll = _MAX_GROUPS * _GROUP
        by_need = _round_up(_cdiv(hw, _NUM_HW_SPLITS), _GROUP)
        thw = max(_GROUP, min(by_vmem, by_unroll, by_need))

    n_row_tiles = _cdiv(rows, tr)
    hw_blocks_total = _cdiv(hw, thw)
    n_steps = _cdiv(hw_blocks_total, _NUM_HW_SPLITS)
    # Any lanes past `hw` in the nominal (split, step) coverage must be masked.
    needs_mask = (_NUM_HW_SPLITS * n_steps * thw) != hw

    def x_index_map(p, i, j):
        blk = p * n_steps + j
        # Clamp fully out-of-range steps of the second half onto the last real
        # block; their contribution is masked to zero inside the kernel.
        return (i, jnp.minimum(blk, hw_blocks_total - 1))

    kernel = functools.partial(
        _spectral_attention_kernel,
        hw=hw, thw=thw, n_steps=n_steps, needs_mask=needs_mask)

    parts = pl.pallas_call(
        kernel,
        out_shape=jax.ShapeDtypeStruct((_NUM_HW_SPLITS, rows, 1), jnp.float32),
        grid=(_NUM_HW_SPLITS, n_row_tiles, n_steps),
        in_specs=[pl.BlockSpec((tr, thw), x_index_map)],
        out_specs=pl.BlockSpec((1, tr, 1), lambda p, i, j: (p, i, 0)),
        scratch_shapes=[pltpu.VMEM((tr, _GROUP), jnp.float32)],
        compiler_params=pltpu.CompilerParams(
            dimension_semantics=("parallel", "parallel", "arbitrary"),
            vmem_limit_bytes=32 * 1024 * 1024,
        ),
        cost_estimate=pl.CostEstimate(
            flops=rows * hw,
            transcendentals=0,
            bytes_accessed=rows * hw * itemsize + _NUM_HW_SPLITS * rows * 4,
        ),
    )(x.reshape(rows, hw))

    # Tiny finalize in XLA: combine the two halves, apply the Conv1d weight
    # folded with the 1/(H*W) mean normalization, then sigmoid.
    scale = conv_weight.reshape(()).astype(jnp.float32) / float(hw)
    y = (parts[0, :, 0] + parts[1, :, 0]) * scale                  # (rows,)
    return jax.nn.sigmoid(y).astype(x.dtype).reshape(b, c, 1, 1)


if __name__ == "__main__":
    key = jax.random.PRNGKey(0)
    kx1, kw, kx2, kx3 = jax.random.split(key, 4)

    # Deterministic Conv1d(out=1, in=1, k=1) weight.
    conv_weight = jax.random.normal(kw, (1, 1, 1), dtype=jnp.float32)

    # 1) Default tiles; exercises the size-2 hw split with the second half
    #    fully masked (hw == thw == 256) plus the index-map clamp.
    x1 = jax.random.normal(kx1, (16, 1, 16, 16), dtype=jnp.float32)
    out1 = jax.block_until_ready(spectral_attention(x1, conv_weight))
    ref1 = _reference(x1, conv_weight)
    assert out1.shape == (16, 1, 1, 1)
    assert jnp.allclose(out1, ref1, atol=1e-5, rtol=1e-5)

    # 2) Ragged H*W (957 lanes), multi-step reduction per half, row padding.
    x2 = jax.random.normal(kx2, (4, 1, 33, 29), dtype=jnp.float32)
    out2 = jax.block_until_ready(spectral_attention(x2, conv_weight, tile_hw=256))
    ref2 = _reference(x2, conv_weight)
    assert out2.shape == (4, 1, 1, 1)
    assert jnp.allclose(out2, ref2, atol=1e-5, rtol=1e-5)

    # 3) bf16 input (16-row sublane rounding path).
    x3 = jax.random.normal(kx3, (8, 1, 32, 32), dtype=jnp.float32).astype(jnp.bfloat16)
    out3 = jax.block_until_ready(spectral_attention(x3, conv_weight))
    ref3 = _reference(x3, conv_weight)
    assert out3.shape == (8, 1, 1, 1)
    assert jnp.allclose(out3.astype(jnp.float32), ref3.astype(jnp.float32),
                        atol=2e-2, rtol=2e-2)

    print("KERNEL_OK")
</pallas_src>

<mosaic_0001>
module attributes {stable_mosaic.version = 11 : i64} {
  func.func @_spectral_attention_kernel(%arg0: i32, %arg1: i32, %arg2: i32, %arg3: memref<16x256xf32, #tpu.memory_space<vmem>>, %arg4: memref<1x16x1xf32, #tpu.memory_space<vmem>>, %arg5: memref<16x256xf32, #tpu.memory_space<vmem>>) attributes {dimension_semantics = [#tpu.dimension_semantics<parallel>, #tpu.dimension_semantics<parallel>, #tpu.dimension_semantics<arbitrary>], iteration_bounds = array<i64: 2, 1, 1>, scalar_prefetch = 0 : i64, scratch_operands = 1 : i64, tpu.core_type = #tpu.core_type<tc>, window_params = [{transform_indices = @transform_0, window_bounds = array<i64: 16, 256>}, {transform_indices = @transform_1, window_bounds = array<i64: 1, 16, 1>}]} {
    %c0_i32 = arith.constant 0 : i32
    %0 = arith.cmpi eq, %arg2, %c0_i32 : i32
    %1 = arith.extui %0 : i1 to i32
    %c0_i32_0 = arith.constant 0 : i32
    %2 = arith.cmpi ne, %1, %c0_i32_0 : i32
    scf.if %2 {
      %cst_10 = arith.constant 0.000000e+00 : f32
      %23 = vector.broadcast %cst_10 : f32 to vector<16x256xf32>
      %c0_11 = arith.constant 0 : index
      %c0_12 = arith.constant 0 : index
      %24 = vector.load %arg5[%c0_11, %c0_12] : memref<16x256xf32, #tpu.memory_space<vmem>>, vector<16x256xf32>
      tpu.vector_store %arg5[%c0_11, %c0_12], %23 {strides = array<i32>} : memref<16x256xf32, #tpu.memory_space<vmem>>, vector<16x256xf32>,
    } else {
    }
    %c1_i32 = arith.constant 1 : i32
    %3 = arith.muli %arg0, %c1_i32 : i32
    %4 = arith.addi %3, %arg2 : i32
    %c256_i32 = arith.constant 256 : i32
    %5 = arith.muli %4, %c256_i32 : i32
    %6 = tpu.iota {dimensions = array<i32: 1>} : vector<1x256xi32>
    %c0 = arith.constant 0 : index
    %c0_1 = arith.constant 0 : index
    %7 = vector.load %arg3[%c0, %c0_1] : memref<16x256xf32, #tpu.memory_space<vmem>>, vector<16x256xf32>
    %c0_i32_2 = arith.constant 0 : i32
    %8 = arith.addi %5, %c0_i32_2 : i32
    %9 = vector.broadcast %8 : i32 to vector<1x256xi32>
    %10 = arith.addi %9, %6 : vector<1x256xi32>
    %c256_i32_3 = arith.constant 256 : i32
    %11 = vector.broadcast %c256_i32_3 : i32 to vector<1x256xi32>
    %12 = arith.cmpi slt, %10, %11 : vector<1x256xi32>
    %cst = arith.constant 0.000000e+00 : f32
    %13 = vector.shape_cast %12 : vector<1x256xi1> to vector<1x256xi1>
    %14 = vector.broadcast %13 : vector<1x256xi1> to vector<16x256xi1>
    %15 = vector.broadcast %cst : f32 to vector<16x256xf32>
    %16 = arith.select %14, %7, %15 : vector<16x256xi1>, vector<16x256xf32>
    %c0_4 = arith.constant 0 : index
    %c0_5 = arith.constant 0 : index
    %17 = vector.load %arg5[%c0_4, %c0_5] : memref<16x256xf32, #tpu.memory_space<vmem>>, vector<16x256xf32>
    %18 = arith.addf %17, %16 : vector<16x256xf32>
    %c0_6 = arith.constant 0 : index
    %c0_7 = arith.constant 0 : index
    %19 = vector.load %arg5[%c0_6, %c0_7] : memref<16x256xf32, #tpu.memory_space<vmem>>, vector<16x256xf32>
    tpu.vector_store %arg5[%c0_6, %c0_7], %18 {strides = array<i32>} : memref<16x256xf32, #tpu.memory_space<vmem>>, vector<16x256xf32>,
    %c0_i32_8 = arith.constant 0 : i32
    %20 = arith.cmpi eq, %arg2, %c0_i32_8 : i32
    %21 = arith.extui %20 : i1 to i32
    %c0_i32_9 = arith.constant 0 : i32
    %22 = arith.cmpi ne, %21, %c0_i32_9 : i32
    scf.if %22 {
      %c0_10 = arith.constant 0 : index
      %c0_11 = arith.constant 0 : index
      %23 = vector.load %arg5[%c0_10, %c0_11] : memref<16x256xf32, #tpu.memory_space<vmem>>, vector<16x256xf32>
      %cst_12 = arith.constant dense<0.000000e+00> : vector<16xf32>
      %24 = vector.multi_reduction <add>, %23, %cst_12 [1] : vector<16x256xf32> to vector<16xf32>
      %25 = vector.shape_cast %24 : vector<16xf32> to vector<16x1xf32>
      %26 = vector.shape_cast %25 : vector<16x1xf32> to vector<1x16x1xf32>
      %c0_13 = arith.constant 0 : index
      %c0_14 = arith.constant 0 : index
      %c0_15 = arith.constant 0 : index
      %27 = vector.load %arg4[%c0_13, %c0_14, %c0_15] : memref<1x16x1xf32, #tpu.memory_space<vmem>>, vector<1x16x1xf32>
      tpu.vector_store %arg4[%c0_13, %c0_14, %c0_15], %26 {strides = array<i32>} : memref<1x16x1xf32, #tpu.memory_space<vmem>>, vector<1x16x1xf32>,
    } else {
    }
    return
  }
  func.func @transform_0(%arg0: i32, %arg1: i32, %arg2: i32) -> (i32, i32) {
    %c1_i32 = arith.constant 1 : i32
    %0 = arith.muli %arg0, %c1_i32 : i32
    %1 = arith.addi %0, %arg2 : i32
    %c0_i32 = arith.constant 0 : i32
    %2 = arith.minsi %1, %c0_i32 : i32
    %c0_i32_0 = arith.constant 0 : i32
    return %arg1, %2 : i32, i32
  }
  func.func @transform_1(%arg0: i32, %arg1: i32, %arg2: i32) -> (i32, i32, i32) {
    %c0_i32 = arith.constant 0 : i32
    %c0_i32_0 = arith.constant 0 : i32
    return %arg0, %arg1, %c0_i32 : i32, i32, i32
  }
}

</mosaic_0001>

<bundles_post_ra>
// kernel: tpu_custom_call.1
= control target key start
LH: loop header
LB: loop body
LE: loop exit
PB: predicated region body
PF: predicated region fallthrough
CT: control target
= control target key end

     0   :  { %6 = vsyncpa [#allocation4], 0  ;;  %s589_s0 = inlined_call_operand.hbm [shape: f32[16,256], index: 0, kind: input, shape index: {}]   ;;  %s590_s1 = inlined_call_operand.vmem [shape: f32[2,16,1], index: 1, kind: output, shape index: {}]  }
   0x1   :  { %8 = vsyncpa [#allocation4 + $0x1], 0  ;;  %s507_s6 = smov 0   ;;  %s509_s7 = smov 0  }
   0x2   :  { %s511_s8 = smov 0   ;;  %s513_s9 = smov 0  }
   0x3   :  { %s515_s10 = smov 0  }
   0x4 LB: > { %s342_s11 = sadd.s32 4294967295, %s492_s10   ;;  %s33_s12 = sadd.s32 1, %s488_s9  ;;  %s492_s10 = sphi %s515_s10, %s14_s10   ;;  %s488_s9 = sphi %s513_s9, %s599_s9   ;;  %s484_s8 = sphi %s511_s8, %s598_s8   ;;  %s480_s7 = sphi %s509_s7, %s579_s7   ;;  %s476_s6 = sphi %s507_s6, %s597_s6  }
   0x5   : > { %p35_p0 = scmp.ge.s32.totalorder %s33_s12, 2  ;;  %p473_p1 = scmp.ne.s32.totalorder %s480_s7, 0 }
   0x6   : > { %p56_p2 = scmp.eq.s32.totalorder %s492_s10, 0  ;;  %p61_p3 = scmp.ne.s32.totalorder %s480_s7, %s476_s6 }
   0x7   : > { %s601_s12 = smov (%p35_p0, %s33_s12), 0  ;;  %p62_p4 = scmp.eq.s32.totalorder %s342_s11, 0 }
   0x8   : > { %p57_p5 = por %p473_p1, %p56_p2  ;;  %p364_p7 = scmp.lt.s32.totalorder %s492_s10, 2 }
   0x9   : > { %p537_p6 = por %p62_p4, %p61_p3  ;;  %s494_s14 = smov [#allocation3]  }
   0xa   : > { %s130_s15 = sshll.u32 %s494_s14, 4  ;;  %p542_p8 = pnand %p364_p7, %p57_p5  ;;  %s131_s15 = int_to_ptr.vmem [resolvable:$true] %s130_s15 }
   0xb   : > { %s593_s13 = scalar_select %p537_p6, 1, 0 }
   0xc   : > { %s594_s16 = scalar_select %p542_p8, 1, 0 }
   0xd   : > { %s415_s19 = scalar_lea.hbm %s589_s0, 512  ;;  %p417_p10 = pneg %p542_p8 }
   0xe   : > { %p416_p9 = scmp.ne.s32.totalorder %s589_s0, %s415_s19  ;;  %p422_p13 = scmp.lt.u32.totalorder %s415_s19, %s415_s19 }
   0xf   : > { %p424_p0 = scmp.lt.u32.totalorder %s415_s19, %s589_s0 }
  0x10   : > { %p418_p11 = pnand %p417_p10, %p416_p9 }
  0x11   : > { %p425_p1 = por %p424_p0, %p422_p13 }
  0x12   : > { %p419_p12 = pneg %p418_p11 }
  0x14   : > { %p426_p2 = pnand %p425_p1, %p419_p12 }
  0x16   : > { %429 = shalt.err (!%p426_p2)
}
  0x17   : > { %s430_s24 = scalar_lea.vmem %s131_s15, 512  ;;  %s437_s25 = scalar_lea.vmem %s131_s15, 1024 }
  0x18   : > { %p431_p3 = scmp.ne.s32.totalorder %s131_s15, %s430_s24  ;;  %p438_p7 = scmp.lt.s32.totalorder %s131_s15, %s131_s15 }
  0x19   : > { %p439_p6 = scmp.lt.s32.totalorder %s437_s25, %s430_s24 }
  0x1a   : > { %p433_p4 = pnand %p431_p3, %p417_p10 }
  0x1b   : > { %p440_p8 = por %p439_p6, %p438_p7 }
  0x1c   : > { %p434_p5 = pneg %p433_p4 }
  0x1e   : > { %p441_p9 = pnand %p440_p8, %p434_p5 }
  0x20   : > { %444 = shalt.err (!%p441_p9)
}
  0x21   : > { %s495_s26 = smov 256   ;;  %s496_s27 = smov 16  }
  0x22   : > { %p595_p11 = scmp.ne.s32.totalorder %s594_s16, 0  ;;  %p349_p12 = scmp.ge.s32.totalorder %s492_s10, 1 }
  0x23   : > { %p138_p13 = scmp.lt.s32.totalorder %s492_s10, 3 }
  0x24   : > { %363 = dma.hbm_to_vmem [thread:$0]  (!%p595_p11), %s589_s0, 512, %s131_s15, [#allocation4], %s495_s26, %s495_s26, %s496_s27  }
  0x25   : > { %p139_p10 = pnand %p349_p12, %p138_p13 }
  0x26   : > { %s144_s30 = sand.u32 (!%p139_p10), 1, %s480_s7   ;;  %p596_p6 = scmp.ne.s32.totalorder (!%p139_p10), %s593_s13, 0 }
  0x27   : > { %142 = sbr.rel (%p139_p10) target bundleno = 206 (0xce), region = 24  ;;  %s350_s2 = sshll.u32 (!%p139_p10), %s144_s30, 5 }
  0x28   : > { %s145_s3 = scalar_lea.sflag (!%p139_p10), [#allocation4], %s144_s30  ;;  %s148_s4 = scalar_lea.vmem (!%p139_p10), [#allocation3], %s350_s2 }
  0x2e   : > { %470 = dma.done.wait (%p596_p6), %s145_s3, 512  }
  0x2f   : > { %472 = vsyncadd (%p596_p6), %s145_s3, 4294966784  ;;  %s353_s5 = sshll.u32 %s484_s8, 8  ;;  %v196_v0 = vlaneseq  ;;  %v199_v6 = vld [vmem:[%s148_s4] sm:$0xff]  ;;  %v200_v7 = vld [vmem:[%s148_s4 + $0x8] sm:$0xff]  ;;  %p177_p8 = scmp.lt.s32.totalorder %s484_s8, 1  ;;  %vm241_vm2 = vcmask 7168  }
  0x30   : > { %v203_v1 = vstv %s353_s5  ;;  %v201_v8 = vld [vmem:[%s148_s4 + $0x10] sm:$0xff]  ;;  %v202_v10 = vld [vmem:[%s148_s4 + $0x18] sm:$0xff] }
  0x31   : > { %v197_v2 = vand.u32 127, %v196_v0  ;;  %s603_s8 = smov (!%p177_p8, %s484_s8), 1 }
  0x32   : > { %s357_s6 = sshll.u32 %s603_s8, 4 }
  0x33   : > { %v198_v3 = vadd.s32 128, %v197_v2  ;;  %v204_v4 = vadd.s32 %v203_v1, %v197_v2  ;;  %s184_s14 = scalar_lea.vmem %s590_s1, %s357_s6 }
  0x35   : > { %v205_v5 = vadd.s32 %v203_v1, %v198_v3  ;;  %vm206_vm0 = vcmp.lt.s32.totalorder %v204_v4, 256 }
  0x36   : > { %v212_v9 = vsel %vm206_vm0, %v199_v6, 0.0  ;;  %v214_v12 = vsel %vm206_vm0, %v201_v8, 0.0 }
  0x37   : > { %vm207_vm1 = vcmp.lt.s32.totalorder %v205_v5, 256 }
  0x38   : > { %v213_v11 = vsel %vm207_vm1, %v200_v7, 0.0  ;;  %v215_v13 = vsel %vm207_vm1, %v202_v10, 0.0 }
  0x39   : > { %v235_v14 = vadd.f32 %v213_v11, %v212_v9  ;;  %v238_v15 = vadd.f32 %v215_v13, %v214_v12 }
  0x3b   : > { %236 = vadd.xlane.f32.xlu0 %v235_v14 }
  0x3f   : > { %239 = vadd.xlane.f32.xlu0 %v238_v15 }
  0xc8   : > { %v237_v16 = vpop.xlane.xlu0 %236 }
  0xc9   : > { %242 = vst.msk [vmem:[%s184_s14] sm:$0xff] %vm241_vm2, %v237_v16 }
  0xcc   : > { %v240_v17 = vpop.xlane.xlu0 %239 }
  0xcd   : > { %243 = vst.msk [vmem:[%s184_s14 + $0x8] sm:$0xff] %vm241_vm2, %v240_v17 }
  0xce PF: > { %s14_s10 = sadd.s32 1, %s492_s10   ;;  %s597_s6 = smov %s480_s7 }
  0xcf   : > { %p11_p0 = scmp.ge.s32.totalorder %s14_s10, 4   ;;  %s579_s7 = smov 0  }
  0xd0   : > { %s598_s8 = smov %s488_s9  ;;  %s599_s9 = smov %s601_s12 }
  0xd1   :  { %13 = sbr.rel (!%p11_p0) target bundleno = 4 (0x4), region = 72 }
  0xd8   :  { %274 = vsyncpa [#allocation4], 1 }
  0xd9   :  { %276 = vsyncpa [#allocation4 + $0x1], 1 }

</bundles_post_ra>
